<compile_context>
chip_gen: v7x
topology: tpu7x:2x2x1
jax: 0.10.0
libtpu: 0.0.40
codegen_flags: <defaults>
</compile_context>

<pallas_src>
import jax
import jax.numpy as jnp
from jax import lax
from jax.experimental import pallas as pl
from jax.experimental.pallas import tpu as pltpu


# Contract the last dim of both operands: out[i, j] = sum_d a[i, d] * b[j, d]
_CONTRACT_LAST = (((1,), (1,)), ((), ()))


def _clip_loss_kernel(temp_ref, zcat_ref, out_ref):
    # temp_ref: SMEM (1,1) f32 temperature
    # zcat_ref: VMEM (B, 2D) MXU-dtype operand [z_i | z_j] (features concat)
    # out_ref:  VMEM (1,1) f32 mean loss
    temp = temp_ref[0, 0]
    inv_temp = 1.0 / temp              # single scalar-unit divide

    b = zcat_ref.shape[0]
    d = zcat_ref.shape[1] // 2

    zcat = zcat_ref[...]               # (B, 2D), native (bf16) MXU dtype
    zi = zcat[:, :d]                   # (B, D) static lane slices of the
    zj = zcat[:, d:]                   # resident operand (no extra DMA)

    # images_similarity + texts_similarity in ONE MXU pass:
    #   [zi|zj] @ [zi|zj].T = zi@zi.T + zj@zj.T        (f32 accumulation)
    sim = lax.dot_general(zcat, zcat, _CONTRACT_LAST,
                          preferred_element_type=jnp.float32)         # (B,B)

    # logits = (z_i @ z_j.T) / temperature  -- MXU, natural layout, f32 acc.
    logits = lax.dot_general(zi, zj, _CONTRACT_LAST,
                             preferred_element_type=jnp.float32) * inv_temp

    # targets = row-softmax(sim/2 * temp); keep the numerator and a (B,1)
    # reciprocal of the row sums instead of a normalized BxB array.
    t = sim * (0.5 * temp)
    t_max = jnp.max(t, axis=-1, keepdims=True)                        # (B,1)
    t_exp = jnp.exp(t - t_max)                                        # (B,B)
    inv_row = pl.reciprocal(jnp.sum(t_exp, axis=-1, keepdims=True),
                            approx=False)                             # (B,1)

    # Row logsumexp with per-row max (texts direction).
    row_max = jnp.max(logits, axis=-1, keepdims=True)                 # (B,1)
    row_lse = jnp.log(jnp.sum(jnp.exp(logits - row_max),
                              axis=-1, keepdims=True)) + row_max      # (B,1)
    # Column logsumexp with per-column max (images direction; replaces the
    # logits.T pass of the reference and stays finite at small temperatures).
    col_max = jnp.max(logits, axis=0, keepdims=True)                  # (1,B)
    col_lse = jnp.log(jnp.sum(jnp.exp(logits - col_max),
                              axis=0, keepdims=True)) + col_max       # (1,B)

    # sum_i (texts_loss[i] + images_loss[i])
    #   = sum_i rowLSE[i]
    #   + sum_i inv_row[i] * sum_j t_exp[i,j] * (colLSE[j] - 2*logits[i,j])
    w = jnp.sum(t_exp * (col_lse - 2.0 * logits),
                axis=-1, keepdims=True)                               # (B,1)
    total = (jnp.sum(row_lse, axis=0, keepdims=True)
             + jnp.sum(inv_row * w, axis=0, keepdims=True))           # (1,1)

    # mean over batch of (images_loss + texts_loss) / 2
    out_ref[...] = total * (0.5 / b)


def clip_loss(z_i, z_j, temperature=1.0, *, mxu_dtype=jnp.bfloat16):
    B, D = z_i.shape
    assert z_j.shape == (B, D)

    # Concatenate on the feature axis so the two gram matmuls fuse into one
    # MXU pass inside the kernel; cast MXU operands to bf16 at the boundary
    # (halves DMA bytes, native MXU throughput). Accumulation stays f32.
    z_cat = jnp.concatenate([z_i, z_j], axis=-1)
    if mxu_dtype is not None:
        z_cat = z_cat.astype(mxu_dtype)
    temp = jnp.full((1, 1), temperature, dtype=jnp.float32)

    itemsize = jnp.dtype(z_cat.dtype).itemsize
    # Single-buffered input + ~8 live BxB f32 temporaries + 1 MiB slack.
    bytes_needed = B * 2 * D * itemsize + 8 * B * B * 4 + (1 << 20)
    try:
        vmem_cap = int(pltpu.get_tpu_info().vmem_capacity_bytes)
    except Exception:
        vmem_cap = 64 * 1024 * 1024   # conservative fallback (v7x per-core)
    vmem_limit = int(min(int(0.9 * vmem_cap),
                         max(4 * 1024 * 1024, bytes_needed)))

    cost = pl.CostEstimate(
        flops=6 * B * B * D,                    # (B,2D)x(2D,B) + (B,D)x(D,B)
        transcendentals=3 * B * B,              # targets exp + row/col LSE exps
        bytes_accessed=B * 2 * D * itemsize + 8,
    )

    out = pl.pallas_call(
        _clip_loss_kernel,
        out_shape=jax.ShapeDtypeStruct((1, 1), jnp.float32),
        in_specs=[
            pl.BlockSpec(memory_space=pltpu.SMEM),   # temperature scalar
            pl.BlockSpec(memory_space=pltpu.VMEM),   # [z_i | z_j], whole array
        ],
        out_specs=pl.BlockSpec(memory_space=pltpu.VMEM),
        compiler_params=pltpu.CompilerParams(vmem_limit_bytes=vmem_limit),
        cost_estimate=cost,
    )(temp, z_cat)
    return out[0, 0]


def _clip_loss_ref(z_i, z_j, temperature=1.0):
    """Pure-JAX reference mirroring the PyTorch module (f32 math)."""
    z_i = z_i.astype(jnp.float32)
    z_j = z_j.astype(jnp.float32)
    logits = (z_i @ z_j.T) / temperature
    images_sim = z_j @ z_j.T
    texts_sim = z_i @ z_i.T
    targets = jax.nn.softmax((images_sim + texts_sim) / 2 * temperature, axis=-1)
    texts_loss = jnp.sum(-targets * jax.nn.log_softmax(logits, axis=-1), axis=1)
    images_loss = jnp.sum(-targets.T * jax.nn.log_softmax(logits.T, axis=-1), axis=1)
    return jnp.mean((images_loss + texts_loss) / 2.0)


if __name__ == "__main__":
    key = jax.random.PRNGKey(0)
    k1, k2 = jax.random.split(key)
    B, D = 8, 32
    z_i = jax.random.normal(k1, (B, D), dtype=jnp.float32)
    z_j = jax.random.normal(k2, (B, D), dtype=jnp.float32)

    # The kernel feeds the MXU bf16 operands (f32 accumulation); compare
    # against the f32 reference evaluated on the same bf16-quantized inputs.
    zi_q = z_i.astype(jnp.bfloat16)
    zj_q = z_j.astype(jnp.bfloat16)

    # temperature=1.0 matches the module default; 0.07 exercises the
    # numerically-stable per-row / per-column logsumexp path.
    for temperature in (1.0, 0.07):
        loss = jax.block_until_ready(clip_loss(z_i, z_j, temperature))
        ref = jax.block_until_ready(_clip_loss_ref(zi_q, zj_q, temperature))
        assert jnp.allclose(loss, ref, rtol=1e-4, atol=1e-4), (temperature, loss, ref)

    print("KERNEL_OK")
</pallas_src>

<mosaic_0001>
module attributes {stable_mosaic.version = 11 : i64} {
  func.func @_clip_loss_kernel(%arg0: memref<1x1xf32, #tpu.memory_space<smem>>, %arg1: memref<8x64xbf16, #tpu.memory_space<vmem>>, %arg2: memref<1x1xf32, #tpu.memory_space<vmem>>) attributes {dimension_semantics = [], scalar_prefetch = 0 : i64, scratch_operands = 0 : i64, tpu.core_type = #tpu.core_type<tc>} {
    %c0 = arith.constant 0 : index
    %c0_0 = arith.constant 0 : index
    %0 = memref.load %arg0[%c0, %c0_0] : memref<1x1xf32, #tpu.memory_space<smem>>
    %cst = arith.constant 1.000000e+00 : f32
    %1 = arith.divf %cst, %0 : f32
    %c0_1 = arith.constant 0 : index
    %c0_2 = arith.constant 0 : index
    %2 = vector.load %arg1[%c0_1, %c0_2] : memref<8x64xbf16, #tpu.memory_space<vmem>>, vector<8x64xbf16>
    %3 = vector.extract_strided_slice %2 {offsets = [0, 0], sizes = [8, 32], strides = [1, 1]} : vector<8x64xbf16> to vector<8x32xbf16>
    %4 = vector.extract_strided_slice %2 {offsets = [0, 32], sizes = [8, 32], strides = [1, 1]} : vector<8x64xbf16> to vector<8x32xbf16>
    %cst_3 = arith.constant dense<0.000000e+00> : vector<8x8xf32>
    %5 = tpu.matmul %2, %2, %cst_3 {dimension_numbers = #tpu.dot_dimension_numbers<[1], [1], [0], [0], [0, 0, 1, 0], [], []>} : vector<8x64xbf16>, vector<8x64xbf16>, vector<8x8xf32> -> vector<8x8xf32>
    %cst_4 = arith.constant dense<0.000000e+00> : vector<8x8xf32>
    %6 = tpu.matmul %3, %4, %cst_4 {dimension_numbers = #tpu.dot_dimension_numbers<[1], [1], [0], [0], [0, 0, 1, 0], [], []>} : vector<8x32xbf16>, vector<8x32xbf16>, vector<8x8xf32> -> vector<8x8xf32>
    %7 = vector.broadcast %1 : f32 to vector<8x8xf32>
    %8 = arith.mulf %6, %7 : vector<8x8xf32>
    %cst_5 = arith.constant 5.000000e-01 : f32
    %9 = arith.mulf %cst_5, %0 : f32
    %10 = vector.broadcast %9 : f32 to vector<8x8xf32>
    %11 = arith.mulf %5, %10 : vector<8x8xf32>
    %cst_6 = arith.constant dense<0xFF800000> : vector<8xf32>
    %12 = vector.multi_reduction <maximumf>, %11, %cst_6 [1] : vector<8x8xf32> to vector<8xf32>
    %13 = vector.shape_cast %12 : vector<8xf32> to vector<8x1xf32>
    %14 = vector.broadcast %13 : vector<8x1xf32> to vector<8x8xf32>
    %15 = arith.subf %11, %14 : vector<8x8xf32>
    %16 = math.exp %15 : vector<8x8xf32>
    %cst_7 = arith.constant dense<0.000000e+00> : vector<8xf32>
    %17 = vector.multi_reduction <add>, %16, %cst_7 [1] : vector<8x8xf32> to vector<8xf32>
    %18 = vector.shape_cast %17 : vector<8xf32> to vector<8x1xf32>
    %19 = tpu.reciprocal %18 : vector<8x1xf32> -> vector<8x1xf32>
    %cst_8 = arith.constant dense<0xFF800000> : vector<8xf32>
    %20 = vector.multi_reduction <maximumf>, %8, %cst_8 [1] : vector<8x8xf32> to vector<8xf32>
    %21 = vector.shape_cast %20 : vector<8xf32> to vector<8x1xf32>
    %22 = vector.broadcast %21 : vector<8x1xf32> to vector<8x8xf32>
    %23 = arith.subf %8, %22 : vector<8x8xf32>
    %24 = math.exp %23 : vector<8x8xf32>
    %cst_9 = arith.constant dense<0.000000e+00> : vector<8xf32>
    %25 = vector.multi_reduction <add>, %24, %cst_9 [1] : vector<8x8xf32> to vector<8xf32>
    %26 = vector.shape_cast %25 : vector<8xf32> to vector<8x1xf32>
    %27 = math.log %26 : vector<8x1xf32>
    %28 = arith.addf %27, %21 : vector<8x1xf32>
    %cst_10 = arith.constant dense<0xFF800000> : vector<8xf32>
    %29 = vector.multi_reduction <maximumf>, %8, %cst_10 [0] : vector<8x8xf32> to vector<8xf32>
    %30 = vector.shape_cast %29 : vector<8xf32> to vector<1x8xf32>
    %31 = vector.broadcast %30 : vector<1x8xf32> to vector<8x8xf32>
    %32 = arith.subf %8, %31 : vector<8x8xf32>
    %33 = math.exp %32 : vector<8x8xf32>
    %cst_11 = arith.constant dense<0.000000e+00> : vector<8xf32>
    %34 = vector.multi_reduction <add>, %33, %cst_11 [0] : vector<8x8xf32> to vector<8xf32>
    %35 = vector.shape_cast %34 : vector<8xf32> to vector<1x8xf32>
    %36 = math.log %35 : vector<1x8xf32>
    %37 = arith.addf %36, %30 : vector<1x8xf32>
    %cst_12 = arith.constant 2.000000e+00 : f32
    %38 = vector.broadcast %cst_12 : f32 to vector<8x8xf32>
    %39 = arith.mulf %38, %8 : vector<8x8xf32>
    %40 = vector.broadcast %37 : vector<1x8xf32> to vector<8x8xf32>
    %41 = arith.subf %40, %39 : vector<8x8xf32>
    %42 = arith.mulf %16, %41 : vector<8x8xf32>
    %cst_13 = arith.constant dense<0.000000e+00> : vector<8xf32>
    %43 = vector.multi_reduction <add>, %42, %cst_13 [1] : vector<8x8xf32> to vector<8xf32>
    %44 = vector.shape_cast %43 : vector<8xf32> to vector<8x1xf32>
    %cst_14 = arith.constant dense<0.000000e+00> : vector<1xf32>
    %45 = vector.multi_reduction <add>, %28, %cst_14 [0] : vector<8x1xf32> to vector<1xf32>
    %46 = vector.shape_cast %45 : vector<1xf32> to vector<1x1xf32>
    %47 = arith.mulf %19, %44 : vector<8x1xf32>
    %cst_15 = arith.constant dense<0.000000e+00> : vector<1xf32>
    %48 = vector.multi_reduction <add>, %47, %cst_15 [0] : vector<8x1xf32> to vector<1xf32>
    %49 = vector.shape_cast %48 : vector<1xf32> to vector<1x1xf32>
    %50 = arith.addf %46, %49 : vector<1x1xf32>
    %cst_16 = arith.constant 6.250000e-02 : f32
    %51 = vector.broadcast %cst_16 : f32 to vector<1x1xf32>
    %52 = arith.mulf %50, %51 : vector<1x1xf32>
    %c0_17 = arith.constant 0 : index
    %c0_18 = arith.constant 0 : index
    %53 = vector.load %arg2[%c0_17, %c0_18] : memref<1x1xf32, #tpu.memory_space<vmem>>, vector<1x1xf32>
    tpu.vector_store %arg2[%c0_17, %c0_18], %52 {strides = array<i32>} : memref<1x1xf32, #tpu.memory_space<vmem>>, vector<1x1xf32>,
    return
  }
}

</mosaic_0001>

<bundles_post_ra>
// kernel: tpu_custom_call.1
= control target key start
LH: loop header
LB: loop body
LE: loop exit
PB: predicated region body
PF: predicated region fallthrough
CT: control target
= control target key end

     0   :  { %8 = vsyncpa [#allocation4], 0  ;;  %s356_s0 = inlined_call_operand.<no memory space> [shape: f32[1,1], index: 0, kind: input, shape index: {}]   ;;  %s357_s1 = inlined_call_operand.hbm [shape: bf16[8,64], index: 1, kind: input, shape index: {}]   ;;  %s358_s2 = inlined_call_operand.hbm [shape: f32[1,1], index: 2, kind: output, shape index: {}]  }
   0x1   :  { %9 = vsyncpa [#allocation5], 0  ;;  %s300_s9 = smov [#allocation3]   ;;  %s252_s13 = scalar_lea.hbm %s357_s1, 64 }
   0x2   :  { %s18_s10 = sshll.u32 %s300_s9, 4  ;;  %p253_p0 = scmp.ne.s32.totalorder %s357_s1, %s252_s13  ;;  %s19_s10 = int_to_ptr.vmem [resolvable:$true] %s18_s10 }
   0x3   :  { %p256_p1 = scmp.lt.u32.totalorder %s252_s13, %s357_s1 }
   0x5   :  { %p258_p2 = pnand %p256_p1, %p253_p0 }
   0x7   :  { %261 = shalt.err (!%p258_p2)
}
   0x8   :  { %s262_s18 = scalar_lea.vmem %s19_s10, 64  ;;  %p267_p4 = scmp.lt.s32.totalorder %s19_s10, %s19_s10 }
   0x9   :  { %p263_p3 = scmp.ne.s32.totalorder %s19_s10, %s262_s18  ;;  %p268_p5 = scmp.lt.s32.totalorder %s262_s18, %s262_s18 }
   0xb   :  { %p269_p6 = por %p268_p5, %p267_p4 }
   0xd   :  { %p270_p7 = pnand %p269_p6, %p263_p3 }
   0xf   :  { %273 = shalt.err (!%p270_p7)
}
  0x10   :  { %21 = dma.hbm_to_vmem [thread:$0]  %s357_s1, 64, %s19_s10, [#allocation4]  }
  0x11   :  { %296 = dma.done.wait [#allocation4], 64  }
  0x12   :  { %297 = vsyncadd [#allocation4], 4294967232  ;;  %v301_v0 = vmov 0.0   ;;  %vm302_vm0 = vmmov 0   ;;  %vm31_vm1 = vcmask 523264   ;;  %s303_s21 = smov 96   ;;  %v27_v4 = vstv %s356_s0 }
  0x13   :  { %218 = vmatprep.subr.bf16.mxu0 %v301_v0  ;;  %220 = vmatprep.mubr.msk.bf16.mxu0 %vm302_vm0, %v301_v0  ;;  %v30_v1 = vld [vmem:[#allocation3] sm:$0xf]  ;;  %238 = vrcp.f32 %v27_v4  ;;  %vm80_vm2 = vcmask 261120   ;;  %s128_s25 = smul.f32 0.5, %s356_s0  ;;  %vm131_vm3 = vcmask 64512   ;;  %s304_s0 = smov [#allocation6]  }
  0x14   :  { %224 = vmatprep.subr.bf16.mxu1 %v301_v0  ;;  %226 = vmatprep.mubr.msk.bf16.mxu1 %vm302_vm0, %v301_v0  ;;  %v33_v2 = vsel %vm31_vm1, %v30_v1, 0  ;;  %v212_v3 = vcombine.low %v30_v1, %v30_v1  ;;  %s202_s27 = sshll.u32 %s304_s0, 4  ;;  %vm194_vm4 = vcmask 0   ;;  %s203_s27 = int_to_ptr.vmem [resolvable:$true] %s202_s27 }
  0x15   :  { %219 = vmatpush3.bf16.xpose.msra.mxu0 %v33_v2  ;;  %v129_v8 = vstv %s128_s25  ;;  %s274_s28 = scalar_lea.vmem %s203_s27, 16  ;;  %s278_s29 = scalar_lea.vmem %s203_s27, 32 }
  0x16   :  { %78 = vrot.lane.b32.xlu0 %v212_v3, %s303_s21  ;;  %p275_p8 = scmp.ne.s32.totalorder %s203_s27, %s274_s28  ;;  %p279_p9 = scmp.lt.s32.totalorder %s203_s27, %s203_s27 }
  0x17   :  { %p280_p10 = scmp.lt.s32.totalorder %s278_s29, %s274_s28 }
  0x19   :  { %p281_p11 = por %p280_p10, %p279_p9 }
  0x1b   :  { %p282_p12 = pnand %p281_p11, %p275_p8 }
  0x1c   :  { %221 = vmatmul.mubr.msk.bf16.vlgmr.msra.gmra.mrb[0].mxu0 %vm31_vm1, %v30_v1 }
  0x1d   :  { %v239_v5 = vpop.eup %238 }
  0x1e   :  { %230 = vpush %v239_v5 }
  0x4f   :  { %s231_s26 = spop %230 }
  0x50   :  { %v126_v15 = vstv %s231_s26 }
  0x88   :  { %v79_v6 = vpop.permute.xlu0 %78 }
  0x89   :  { %v84_v7 = vsel %vm80_vm2, %v79_v6, 0 }
  0x8a   :  { %225 = vmatpush3.bf16.xpose.msra.mxu1 %v84_v7 }
  0x91   :  { %227 = vmatmul.mubr.msk.bf16.vlgmr.msra.gmra.mrb[0].mxu1 %vm80_vm2, %v30_v1 }
  0xef   :  { %v69_v9 = vpop.f32.mrb[0].mxu0 }
  0xf0   :  { %v130_v10 = vmul.f32 %v129_v8, %v69_v9  ;;  %v222_v11 = vpop.f32.mrb[1].mxu0 }
  0xf1   :  { %v72_v12 = vpop.f32.mrb[2].mxu0 }
  0xf2   :  { %v132_v13 = vsel %vm131_vm3, %v130_v10, -inf  ;;  %v223_v14 = vpop.f32.mrb[3].mxu0 }
  0xf3   :  { %133 = vmax.xlane.f32.xlu1 %v132_v13 }
 0x164   :  { %v120_v16 = vpop.f32.mrb[0].mxu1 }
 0x165   :  { %v127_v17 = vmul.f32 %v126_v15, %v120_v16  ;;  %v228_v18 = vpop.f32.mrb[1].mxu1 }
 0x166   :  { %v123_v19 = vpop.f32.mrb[2].mxu1 }
 0x167   :  { %v229_v20 = vpop.f32.mrb[3].mxu1  ;;  %v142_v21 = vsel %vm131_vm3, %v127_v17, -inf  ;;  %v173_v47 = vmul.f32 2.0, %v127_v17 }
 0x168   :  { %143 = vmax.xlane.f32.xlu0 %v142_v21  ;;  %v154_v22 = vrot.slane %v142_v21, 4 }
 0x16a   :  { %v155_v23 = vmax.f32 %v142_v21, %v154_v22 }
 0x16c   :  { %v156_v24 = vrot.slane %v155_v23, 2 }
 0x16e   :  { %v157_v25 = vmax.f32 %v155_v23, %v156_v24 }
 0x170   :  { %v158_v26 = vrot.slane %v157_v25, 1 }
 0x172   :  { %v159_v27 = vmax.f32 %v157_v25, %v158_v26 }
 0x174   :  { %v160_v28 = vsub.f32 %v127_v17, %v159_v27 }
 0x176   :  { %v161_v29 = vmul.f32 1.442695, %v160_v28 }
 0x178   :  { %240 = vpow2.f32 %v161_v29 }
 0x180   :  { %v134_v38 = vpop.xlane.xlu1 %133 }
 0x181   :  { %v135_v39 = vsub.f32 %v130_v10, %v134_v38 }
 0x182   :  { %v241_v30 = vpop.eup %240 }
 0x183   :  { %v163_v31 = vsel %vm131_vm3, %v241_v30, 0.0  ;;  %v136_v42 = vmul.f32 1.442695, %v135_v39 }
 0x184   :  { %v164_v32 = vrot.slane %v163_v31, 4 }
 0x186   :  { %v165_v33 = vadd.f32 %v164_v32, %v163_v31 }
 0x188   :  { %v166_v34 = vrot.slane %v165_v33, 2 }
 0x18a   :  { %v167_v35 = vadd.f32 %v166_v34, %v165_v33 }
 0x18c   :  { %v168_v36 = vrot.slane %v167_v35, 1 }
 0x18e   :  { %v169_v37 = vadd.f32 %v168_v36, %v167_v35 }
 0x190   :  { %242 = vlog2.f32 %v169_v37 }
 0x19a   :  { %v243_v44 = vpop.eup %242 }
 0x19b   :  { %v171_v45 = vmul.f32 0.6931472, %v243_v44 }
 0x19d   :  { %v172_v46 = vadd.f32 %v171_v45, %v159_v27 }
 0x19f   :  { %v174_v50 = vsub.f32 %v172_v46, %v173_v47 }
 0x1f5   :  { %v144_v40 = vpop.xlane.xlu0 %143 }
 0x1f6   :  { %v145_v41 = vsub.f32 %v127_v17, %v144_v40 }
 0x1f8   :  { %v146_v43 = vmul.f32 1.442695, %v145_v41 }
 0x1fa   :  { %244 = vpow2.f32 %v146_v43 }
 0x1fb   :  { %246 = vpow2.f32 %v136_v42 }
 0x204   :  { %v245_v48 = vpop.eup %244 }
 0x205   :  { %v148_v49 = vsel %vm131_vm3, %v245_v48, 0.0  ;;  %v247_v51 = vpop.eup %246 }
 0x206   :  { %149 = vadd.xlane.f32.xlu1 %v148_v49  ;;  %v138_v52 = vsel %vm131_vm3, %v247_v51, 0.0  ;;  %v175_v53 = vmul.f32 %v247_v51, %v174_v50 }
 0x208   :  { %v176_v54 = vsel %vm131_vm3, %v175_v53, 0.0 }
 0x20a   :  { %139 = vadd.xlane.f32.xlu1 %v138_v52 }
 0x20e   :  { %177 = vadd.xlane.f32.xlu1 %v176_v54 }
 0x293   :  { %v150_v55 = vpop.xlane.xlu1 %149 }
 0x294   :  { %248 = vlog2.f32 %v150_v55 }
 0x297   :  { %v140_v56 = vpop.xlane.xlu1 %139 }
 0x298   :  { %250 = vrcp.f32 %v140_v56 }
 0x29b   :  { %v178_v61 = vpop.xlane.xlu1 %177 }
 0x29e   :  { %v249_v57 = vpop.eup %248 }
 0x29f   :  { %v152_v58 = vmul.f32 0.6931472, %v249_v57 }
 0x2a1   :  { %v153_v59 = vadd.f32 %v152_v58, %v144_v40 }
 0x2a2   :  { %v251_v60 = vpop.eup %250 }
 0x2a3   :  { %v179_v62 = vrot.slane %v153_v59, 4  ;;  %v185_v63 = vmul.f32 %v251_v60, %v178_v61 }
 0x2a5   :  { %v180_v0 = vadd.f32 %v179_v62, %v153_v59  ;;  %v186_v1 = vrot.slane %v185_v63, 4 }
 0x2a7   :  { %v181_v2 = vrot.slane %v180_v0, 2  ;;  %v187_v3 = vadd.f32 %v186_v1, %v185_v63 }
 0x2a9   :  { %v182_v4 = vadd.f32 %v181_v2, %v180_v0  ;;  %v188_v5 = vrot.slane %v187_v3, 2 }
 0x2ab   :  { %v189_v6 = vadd.f32 %v188_v5, %v187_v3  ;;  %v183_v7 = vrot.slane %v182_v4, 1 }
 0x2ad   :  { %v190_v8 = vrot.slane %v189_v6, 1  ;;  %v184_v10 = vadd.f32 %v183_v7, %v182_v4 }
 0x2af   :  { %v191_v9 = vadd.f32 %v190_v8, %v189_v6 }
 0x2b1   :  { %v192_v11 = vadd.f32 %v191_v9, %v184_v10 }
 0x2b3   :  { %v193_v12 = vmul.f32 0.0625, %v192_v11 }
 0x2b5   :  { %195 = vst.msk [vmem:[#allocation6] sm:$0x1] %vm194_vm4, %v193_v12 }
 0x2b6   :  { %285 = shalt.err (!%p282_p12)
}
 0x2b7   :  { %s286_s4 = scalar_lea.hbm %s358_s2, 16 }
 0x2b8   :  { %p287_p13 = scmp.ne.s32.totalorder %s358_s2, %s286_s4  ;;  %p290_p0 = scmp.lt.u32.totalorder %s286_s4, %s358_s2 }
 0x2ba   :  { %p292_p1 = pnand %p290_p0, %p287_p13 }
 0x2bc   :  { %295 = shalt.err (!%p292_p1)
}
 0x2bd   :  { %205 = dma.vmem_to_hbm [thread:$0]  %s203_s27, 16, %s358_s2, [#allocation5]  }
 0x2be   :  { %298 = dma.done.wait [#allocation5], 16  }
 0x2bf   :  { %299 = vsyncadd [#allocation5], 4294967280 }
 0x2c0   :  { %209 = vsyncpa [#allocation4], 1 }
 0x2c1   :  { %210 = vsyncpa [#allocation5], 1 }

</bundles_post_ra>
